<compile_context>
chip_gen: v7x
topology: tpu7x:2x2x1
jax: 0.10.0
libtpu: 0.0.40
codegen_flags: <defaults>
</compile_context>

<pallas_src>
import functools

import jax
import jax.numpy as jnp
from jax.experimental import pallas as pl
from jax.experimental.pallas import tpu as pltpu


def _round_up(x, m):
    return ((x + m - 1) // m) * m


def _prefers_multi_step():
    # v7x has 2 TensorCores per chip: keep >=2 grid steps so the "parallel"
    # batch axis can shard across both. v5e/v6e have 1 TC -> single max tile.
    try:
        kind = jax.devices()[0].device_kind.lower()
        return ("v7" in kind) or ("7x" in kind)
    except Exception:  # pragma: no cover - device query is best-effort only
        return False


def _default_block_b(B):
    B8 = _round_up(max(B, 1), 8)
    two_step = _prefers_multi_step() and B8 >= 16
    if B8 <= 1024 and not two_step:
        return B8                                   # one maximal tile
    if two_step and B8 <= 2048:
        return _round_up(pl.cdiv(B8, 2), 8)          # exactly two tiles
    for cand in (1024, 512, 256):
        if B >= 2 * cand:
            return cand
    return 256


def _layer_norm(x, n_valid, eps=1e-5):
    # Two-pass (centered) LayerNorm over the last (lane) axis, no affine.
    # Columns >= n_valid are exact zero padding: they contribute 0 to the sum
    # (so the mean needs no mask) and are masked out of the variance.
    n_pad = x.shape[-1]
    inv_n = 1.0 / n_valid
    mean = jnp.sum(x, axis=-1, keepdims=True) * inv_n
    c = x - mean
    if n_pad != n_valid:
        col = jax.lax.broadcasted_iota(jnp.int32, (1, n_pad), 1)
        c = jnp.where(col < n_valid, c, 0.0)
    var = jnp.sum(c * c, axis=-1, keepdims=True) * inv_n
    return c * jax.lax.rsqrt(var + eps)


def _leaky_relu(x, negative_slope=0.01):
    return jnp.maximum(x, negative_slope * x)


def mlp_kernel(x_ref, w1_ref, b1_ref, w2_ref, b2_ref, w3_ref, b3_ref, o_ref,
               *, n_hd, n_out, n_sub):
    mxu_dt = w1_ref.dtype          # bf16 (or f32) into the MXU, f32 accumulate
    rows = x_ref.shape[0]
    sub = rows // n_sub

    w1 = w1_ref[...]
    w2 = w2_ref[...]
    w3 = w3_ref[...]
    b1 = b1_ref[...]
    b2 = b2_ref[...]
    b3 = b3_ref[...]

    # Static 2-way unroll over row halves (when enabled) so one sub-tile's
    # LN / activation epilogue can co-issue with the other's next matmul.
    for t in range(n_sub):
        r0 = t * sub
        x = x_ref[pl.ds(r0, sub), :].astype(mxu_dt)

        # fc1 -> bn2 (LayerNorm over n_hd) -> leaky_relu
        h = jnp.dot(x, w1, preferred_element_type=jnp.float32) + b1
        h = _leaky_relu(_layer_norm(h, n_hd))

        # fc2 -> bn2 -> leaky_relu
        h = jnp.dot(h.astype(mxu_dt), w2, preferred_element_type=jnp.float32) + b2
        h = _leaky_relu(_layer_norm(h, n_hd))

        # fc3 (lane-padded to 128) -> bn3 (LayerNorm over true n_out) -> tanh(.-2)
        y = jnp.dot(h.astype(mxu_dt), w3, preferred_element_type=jnp.float32) + b3
        y = jnp.tanh(_layer_norm(y, n_out) - 2.0)

        o_ref[pl.ds(r0, sub), :] = y.astype(o_ref.dtype)


def prepare_params(w1, b1, w2, b2, w3, b3, mxu_dtype=jnp.bfloat16):
    """Cast weights to the MXU dtype and zero-pad all lane dims to multiples of
    128. Call ONCE outside the jitted forward (no per-call HBM cast pass)."""
    n_in, n_hd = w1.shape
    n_out = w3.shape[1]
    n_hd_p = _round_up(n_hd, 128)
    n_out_p = _round_up(n_out, 128)

    def pad2(a, rows, cols):
        pr, pc = rows - a.shape[0], cols - a.shape[1]
        return jnp.pad(a, ((0, pr), (0, pc))) if (pr or pc) else a

    w1p = pad2(w1, n_in, n_hd_p).astype(mxu_dtype)
    w2p = pad2(w2, n_hd_p, n_hd_p).astype(mxu_dtype)
    w3p = pad2(w3, n_hd_p, n_out_p).astype(mxu_dtype)
    b1p = pad2(b1.astype(jnp.float32), 1, n_hd_p)
    b2p = pad2(b2.astype(jnp.float32), 1, n_hd_p)
    b3p = pad2(b3.astype(jnp.float32), 1, n_out_p)
    return (w1p, b1p, w2p, b2p, w3p, b3p), (n_in, n_hd, n_out)


@functools.partial(jax.jit, static_argnames=("n_hd", "n_out", "block_b"))
def mlp_forward(x, params, *, n_hd, n_out, block_b=None):
    w1, b1, w2, b2, w3, b3 = params
    B, n_in = x.shape
    n_hd_p = w1.shape[1]
    n_out_p = w3.shape[1]

    if block_b is None:
        block_b = _default_block_b(B)
    block_b = _round_up(min(block_b, _round_up(B, 8)), 8)
    grid = (pl.cdiv(B, block_b),)          # ragged last block: masked writes
    n_sub = 2 if (block_b >= 128 and block_b % 16 == 0) else 1

    # Honest VMEM budget: double-buffered x/out streams + resident weights +
    # f32 intermediates, x2 headroom; a few MiB in practice, capped at 32 MiB.
    itm = jnp.dtype(x.dtype).itemsize
    wsz = jnp.dtype(w1.dtype).itemsize
    w_bytes = ((n_in * n_hd_p + n_hd_p * n_hd_p + n_hd_p * n_out_p) * wsz
               + (2 * n_hd_p + n_out_p) * 4)
    io_bytes = block_b * (n_in + n_out_p) * itm
    act_bytes = 4 * block_b * n_hd_p * 4
    need = 2 * w_bytes + 2 * io_bytes + act_bytes
    vmem_limit = int(min(max(2 * need, 16 << 20), 32 << 20))

    cost = pl.CostEstimate(
        flops=2 * B * (n_in * n_hd + n_hd * n_hd + n_hd * n_out),
        transcendentals=B * (n_out + 3),   # tanh per output elem + 3 rsqrt/row
        bytes_accessed=B * (n_in + n_out_p) * itm + w_bytes,
    )

    kernel = functools.partial(mlp_kernel, n_hd=n_hd, n_out=n_out, n_sub=n_sub)

    out = pl.pallas_call(
        kernel,
        out_shape=jax.ShapeDtypeStruct((B, n_out_p), x.dtype),
        grid_spec=pl.GridSpec(
            grid=grid,
            in_specs=[
                pl.BlockSpec((block_b, n_in), lambda i: (i, 0)),   # x tile
                pl.BlockSpec((n_in, n_hd_p), lambda i: (0, 0)),    # W1 (in, out)
                pl.BlockSpec((1, n_hd_p), lambda i: (0, 0)),       # b1
                pl.BlockSpec((n_hd_p, n_hd_p), lambda i: (0, 0)),  # W2
                pl.BlockSpec((1, n_hd_p), lambda i: (0, 0)),       # b2
                pl.BlockSpec((n_hd_p, n_out_p), lambda i: (0, 0)), # W3 (padded)
                pl.BlockSpec((1, n_out_p), lambda i: (0, 0)),      # b3 (padded)
            ],
            out_specs=pl.BlockSpec((block_b, n_out_p), lambda i: (i, 0)),
        ),
        compiler_params=pltpu.CompilerParams(
            dimension_semantics=("parallel",),
            vmem_limit_bytes=vmem_limit,
        ),
        cost_estimate=cost,
    )(x, w1, b1, w2, b2, w3, b3)

    # Lane-padded columns are sliced away here (only cheap column slice left;
    # no batch pad / row slice HBM passes anymore).
    return out if n_out_p == n_out else out[:, :n_out]


def init_linear(key, n_in, n_out, dtype=jnp.float32):
    # Matches torch.nn.Linear default init: U(-1/sqrt(n_in), 1/sqrt(n_in)).
    kw, kb = jax.random.split(key)
    bound = 1.0 / (n_in ** 0.5)
    # PyTorch weight is (out, in); we return the transposed (in, out) layout.
    w = jax.random.uniform(kw, (n_out, n_in), dtype, -bound, bound).T
    b = jax.random.uniform(kb, (1, n_out), dtype, -bound, bound)
    return w, b


def reference_forward(x, w1, b1, w2, b2, w3, b3):
    def ln(v, eps=1e-5):
        m = jnp.mean(v, axis=-1, keepdims=True)
        c = v - m
        return c * jax.lax.rsqrt(jnp.mean(c * c, axis=-1, keepdims=True) + eps)

    def lrelu(v):
        return jnp.where(v >= 0, v, 0.01 * v)

    h = lrelu(ln(x @ w1 + b1))
    h = lrelu(ln(h @ w2 + b2))
    return jnp.tanh(ln(h @ w3 + b3) - 2.0)


if __name__ == "__main__":
    n_in, n_hd, n_out = 64, 128, 32

    key = jax.random.PRNGKey(0)
    kx, k1, k2, k3, kx2 = jax.random.split(key, 5)

    w1, b1 = init_linear(k1, n_in, n_hd)
    w2, b2 = init_linear(k2, n_hd, n_hd)
    w3, b3 = init_linear(k3, n_hd, n_out)

    # Small deterministic check, f32-through-MXU path (tight tolerance).
    params_f32, _ = prepare_params(w1, b1, w2, b2, w3, b3, mxu_dtype=jnp.float32)
    x = jax.random.normal(kx, (8, n_in), jnp.float32)
    out = jax.block_until_ready(mlp_forward(x, params_f32, n_hd=n_hd, n_out=n_out))
    ref = reference_forward(x, w1, b1, w2, b2, w3, b3)
    assert out.shape == (8, n_out)
    assert jnp.allclose(out, ref, atol=1e-4, rtol=1e-4), "f32 mismatch vs reference"

    # Non-divisible batch exercising the ragged last block (masked OOB writes),
    # bf16 weights into the MXU (f32 accumulation) -> relaxed tolerance.
    params_bf16, _ = prepare_params(w1, b1, w2, b2, w3, b3, mxu_dtype=jnp.bfloat16)
    x2 = jax.random.normal(kx2, (37, n_in), jnp.float32)
    out2 = jax.block_until_ready(mlp_forward(x2, params_bf16, n_hd=n_hd, n_out=n_out))
    ref2 = reference_forward(x2, w1, b1, w2, b2, w3, b3)
    assert out2.shape == (37, n_out)
    assert jnp.allclose(out2, ref2, atol=5e-2, rtol=5e-2), "bf16 mismatch vs reference"

    print("KERNEL_OK")
</pallas_src>

<mosaic_0001>
module attributes {stable_mosaic.version = 11 : i64} {
  func.func @mlp_kernel(%arg0: i32, %arg1: memref<8x64xf32, #tpu.memory_space<vmem>>, %arg2: memref<64x128xf32, #tpu.memory_space<vmem>>, %arg3: memref<1x128xf32, #tpu.memory_space<vmem>>, %arg4: memref<128x128xf32, #tpu.memory_space<vmem>>, %arg5: memref<1x128xf32, #tpu.memory_space<vmem>>, %arg6: memref<128x128xf32, #tpu.memory_space<vmem>>, %arg7: memref<1x128xf32, #tpu.memory_space<vmem>>, %arg8: memref<8x128xf32, #tpu.memory_space<vmem>>) attributes {dimension_semantics = [#tpu.dimension_semantics<parallel>], iteration_bounds = array<i64: 1>, scalar_prefetch = 0 : i64, scratch_operands = 0 : i64, tpu.core_type = #tpu.core_type<tc>, window_params = [{transform_indices = @transform_0, window_bounds = array<i64: 8, 64>}, {pipeline_mode = #tpu.pipeline_mode<synchronous>, transform_indices = @transform_1, window_bounds = array<i64: 64, 128>}, {pipeline_mode = #tpu.pipeline_mode<synchronous>, transform_indices = @transform_2, window_bounds = array<i64: 1, 128>}, {pipeline_mode = #tpu.pipeline_mode<synchronous>, transform_indices = @transform_3, window_bounds = array<i64: 128, 128>}, {pipeline_mode = #tpu.pipeline_mode<synchronous>, transform_indices = @transform_4, window_bounds = array<i64: 1, 128>}, {pipeline_mode = #tpu.pipeline_mode<synchronous>, transform_indices = @transform_5, window_bounds = array<i64: 128, 128>}, {pipeline_mode = #tpu.pipeline_mode<synchronous>, transform_indices = @transform_6, window_bounds = array<i64: 1, 128>}, {transform_indices = @transform_7, window_bounds = array<i64: 8, 128>}]} {
    %c0 = arith.constant 0 : index
    %c0_0 = arith.constant 0 : index
    %0 = vector.load %arg2[%c0, %c0_0] : memref<64x128xf32, #tpu.memory_space<vmem>>, vector<64x128xf32>
    %c0_1 = arith.constant 0 : index
    %c0_2 = arith.constant 0 : index
    %1 = vector.load %arg4[%c0_1, %c0_2] : memref<128x128xf32, #tpu.memory_space<vmem>>, vector<128x128xf32>
    %c0_3 = arith.constant 0 : index
    %c0_4 = arith.constant 0 : index
    %2 = vector.load %arg6[%c0_3, %c0_4] : memref<128x128xf32, #tpu.memory_space<vmem>>, vector<128x128xf32>
    %c0_5 = arith.constant 0 : index
    %c0_6 = arith.constant 0 : index
    %3 = vector.load %arg3[%c0_5, %c0_6] : memref<1x128xf32, #tpu.memory_space<vmem>>, vector<1x128xf32>
    %c0_7 = arith.constant 0 : index
    %c0_8 = arith.constant 0 : index
    %4 = vector.load %arg5[%c0_7, %c0_8] : memref<1x128xf32, #tpu.memory_space<vmem>>, vector<1x128xf32>
    %c0_9 = arith.constant 0 : index
    %c0_10 = arith.constant 0 : index
    %5 = vector.load %arg7[%c0_9, %c0_10] : memref<1x128xf32, #tpu.memory_space<vmem>>, vector<1x128xf32>
    %c0_11 = arith.constant 0 : index
    %c0_12 = arith.constant 0 : index
    %6 = vector.load %arg1[%c0_11, %c0_12] : memref<8x64xf32, #tpu.memory_space<vmem>>, vector<8x64xf32>
    %cst = arith.constant dense<0.000000e+00> : vector<8x128xf32>
    %7 = tpu.matmul %6, %0, %cst {dimension_numbers = #tpu.dot_dimension_numbers<[1], [0], [0], [1], [0, 0, 1, 1], [], []>} : vector<8x64xf32>, vector<64x128xf32>, vector<8x128xf32> -> vector<8x128xf32>
    %8 = vector.broadcast %3 : vector<1x128xf32> to vector<8x128xf32>
    %9 = arith.addf %7, %8 : vector<8x128xf32>
    %cst_13 = arith.constant dense<0.000000e+00> : vector<8xf32>
    %10 = vector.multi_reduction <add>, %9, %cst_13 [1] : vector<8x128xf32> to vector<8xf32>
    %11 = vector.shape_cast %10 : vector<8xf32> to vector<8x1xf32>
    %cst_14 = arith.constant 7.812500e-03 : f32
    %12 = vector.broadcast %cst_14 : f32 to vector<8x1xf32>
    %13 = arith.mulf %11, %12 : vector<8x1xf32>
    %14 = vector.broadcast %13 : vector<8x1xf32> to vector<8x128xf32>
    %15 = arith.subf %9, %14 : vector<8x128xf32>
    %16 = arith.mulf %15, %15 : vector<8x128xf32>
    %cst_15 = arith.constant dense<0.000000e+00> : vector<8xf32>
    %17 = vector.multi_reduction <add>, %16, %cst_15 [1] : vector<8x128xf32> to vector<8xf32>
    %18 = vector.shape_cast %17 : vector<8xf32> to vector<8x1xf32>
    %cst_16 = arith.constant 7.812500e-03 : f32
    %19 = vector.broadcast %cst_16 : f32 to vector<8x1xf32>
    %20 = arith.mulf %18, %19 : vector<8x1xf32>
    %cst_17 = arith.constant 9.99999974E-6 : f32
    %21 = vector.broadcast %cst_17 : f32 to vector<8x1xf32>
    %22 = arith.addf %20, %21 : vector<8x1xf32>
    %23 = math.rsqrt %22 : vector<8x1xf32>
    %24 = vector.broadcast %23 : vector<8x1xf32> to vector<8x128xf32>
    %25 = arith.mulf %15, %24 : vector<8x128xf32>
    %cst_18 = arith.constant 0.00999999977 : f32
    %26 = vector.broadcast %cst_18 : f32 to vector<8x128xf32>
    %27 = arith.mulf %26, %25 : vector<8x128xf32>
    %28 = arith.maximumf %25, %27 : vector<8x128xf32>
    %cst_19 = arith.constant dense<0.000000e+00> : vector<8x128xf32>
    %29 = tpu.matmul %28, %1, %cst_19 {dimension_numbers = #tpu.dot_dimension_numbers<[1], [0], [0], [1], [0, 0, 1, 1], [], []>} : vector<8x128xf32>, vector<128x128xf32>, vector<8x128xf32> -> vector<8x128xf32>
    %30 = vector.broadcast %4 : vector<1x128xf32> to vector<8x128xf32>
    %31 = arith.addf %29, %30 : vector<8x128xf32>
    %cst_20 = arith.constant dense<0.000000e+00> : vector<8xf32>
    %32 = vector.multi_reduction <add>, %31, %cst_20 [1] : vector<8x128xf32> to vector<8xf32>
    %33 = vector.shape_cast %32 : vector<8xf32> to vector<8x1xf32>
    %cst_21 = arith.constant 7.812500e-03 : f32
    %34 = vector.broadcast %cst_21 : f32 to vector<8x1xf32>
    %35 = arith.mulf %33, %34 : vector<8x1xf32>
    %36 = vector.broadcast %35 : vector<8x1xf32> to vector<8x128xf32>
    %37 = arith.subf %31, %36 : vector<8x128xf32>
    %38 = arith.mulf %37, %37 : vector<8x128xf32>
    %cst_22 = arith.constant dense<0.000000e+00> : vector<8xf32>
    %39 = vector.multi_reduction <add>, %38, %cst_22 [1] : vector<8x128xf32> to vector<8xf32>
    %40 = vector.shape_cast %39 : vector<8xf32> to vector<8x1xf32>
    %cst_23 = arith.constant 7.812500e-03 : f32
    %41 = vector.broadcast %cst_23 : f32 to vector<8x1xf32>
    %42 = arith.mulf %40, %41 : vector<8x1xf32>
    %cst_24 = arith.constant 9.99999974E-6 : f32
    %43 = vector.broadcast %cst_24 : f32 to vector<8x1xf32>
    %44 = arith.addf %42, %43 : vector<8x1xf32>
    %45 = math.rsqrt %44 : vector<8x1xf32>
    %46 = vector.broadcast %45 : vector<8x1xf32> to vector<8x128xf32>
    %47 = arith.mulf %37, %46 : vector<8x128xf32>
    %cst_25 = arith.constant 0.00999999977 : f32
    %48 = vector.broadcast %cst_25 : f32 to vector<8x128xf32>
    %49 = arith.mulf %48, %47 : vector<8x128xf32>
    %50 = arith.maximumf %47, %49 : vector<8x128xf32>
    %cst_26 = arith.constant dense<0.000000e+00> : vector<8x128xf32>
    %51 = tpu.matmul %50, %2, %cst_26 {dimension_numbers = #tpu.dot_dimension_numbers<[1], [0], [0], [1], [0, 0, 1, 1], [], []>} : vector<8x128xf32>, vector<128x128xf32>, vector<8x128xf32> -> vector<8x128xf32>
    %52 = vector.broadcast %5 : vector<1x128xf32> to vector<8x128xf32>
    %53 = arith.addf %51, %52 : vector<8x128xf32>
    %cst_27 = arith.constant dense<0.000000e+00> : vector<8xf32>
    %54 = vector.multi_reduction <add>, %53, %cst_27 [1] : vector<8x128xf32> to vector<8xf32>
    %55 = vector.shape_cast %54 : vector<8xf32> to vector<8x1xf32>
    %cst_28 = arith.constant 3.125000e-02 : f32
    %56 = vector.broadcast %cst_28 : f32 to vector<8x1xf32>
    %57 = arith.mulf %55, %56 : vector<8x1xf32>
    %58 = vector.broadcast %57 : vector<8x1xf32> to vector<8x128xf32>
    %59 = arith.subf %53, %58 : vector<8x128xf32>
    %60 = tpu.iota {dimensions = array<i32: 1>} : vector<1x128xi32>
    %c32_i32 = arith.constant 32 : i32
    %61 = vector.broadcast %c32_i32 : i32 to vector<1x128xi32>
    %62 = arith.cmpi slt, %60, %61 : vector<1x128xi32>
    %cst_29 = arith.constant 0.000000e+00 : f32
    %63 = vector.shape_cast %62 : vector<1x128xi1> to vector<1x128xi1>
    %64 = vector.broadcast %63 : vector<1x128xi1> to vector<8x128xi1>
    %65 = vector.broadcast %cst_29 : f32 to vector<8x128xf32>
    %66 = arith.select %64, %59, %65 : vector<8x128xi1>, vector<8x128xf32>
    %67 = arith.mulf %66, %66 : vector<8x128xf32>
    %cst_30 = arith.constant dense<0.000000e+00> : vector<8xf32>
    %68 = vector.multi_reduction <add>, %67, %cst_30 [1] : vector<8x128xf32> to vector<8xf32>
    %69 = vector.shape_cast %68 : vector<8xf32> to vector<8x1xf32>
    %cst_31 = arith.constant 3.125000e-02 : f32
    %70 = vector.broadcast %cst_31 : f32 to vector<8x1xf32>
    %71 = arith.mulf %69, %70 : vector<8x1xf32>
    %cst_32 = arith.constant 9.99999974E-6 : f32
    %72 = vector.broadcast %cst_32 : f32 to vector<8x1xf32>
    %73 = arith.addf %71, %72 : vector<8x1xf32>
    %74 = math.rsqrt %73 : vector<8x1xf32>
    %75 = vector.broadcast %74 : vector<8x1xf32> to vector<8x128xf32>
    %76 = arith.mulf %66, %75 : vector<8x128xf32>
    %cst_33 = arith.constant 2.000000e+00 : f32
    %77 = vector.broadcast %cst_33 : f32 to vector<8x128xf32>
    %78 = arith.subf %76, %77 : vector<8x128xf32>
    %79 = math.tanh %78 : vector<8x128xf32>
    %c0_34 = arith.constant 0 : index
    %c0_35 = arith.constant 0 : index
    %80 = vector.load %arg8[%c0_34, %c0_35] : memref<8x128xf32, #tpu.memory_space<vmem>>, vector<8x128xf32>
    tpu.vector_store %arg8[%c0_34, %c0_35], %79 {strides = array<i32>} : memref<8x128xf32, #tpu.memory_space<vmem>>, vector<8x128xf32>,
    return
  }
  func.func @transform_0(%arg0: i32) -> (i32, i32) {
    %c0_i32 = arith.constant 0 : i32
    %c0_i32_0 = arith.constant 0 : i32
    return %arg0, %c0_i32 : i32, i32
  }
  func.func @transform_1(%arg0: i32) -> (i32, i32) {
    %c0_i32 = arith.constant 0 : i32
    %c0_i32_0 = arith.constant 0 : i32
    %c0_i32_1 = arith.constant 0 : i32
    return %c0_i32, %c0_i32_0 : i32, i32
  }
  func.func @transform_2(%arg0: i32) -> (i32, i32) {
    %c0_i32 = arith.constant 0 : i32
    %c0_i32_0 = arith.constant 0 : i32
    %c0_i32_1 = arith.constant 0 : i32
    return %c0_i32, %c0_i32_0 : i32, i32
  }
  func.func @transform_3(%arg0: i32) -> (i32, i32) {
    %c0_i32 = arith.constant 0 : i32
    %c0_i32_0 = arith.constant 0 : i32
    %c0_i32_1 = arith.constant 0 : i32
    return %c0_i32, %c0_i32_0 : i32, i32
  }
  func.func @transform_4(%arg0: i32) -> (i32, i32) {
    %c0_i32 = arith.constant 0 : i32
    %c0_i32_0 = arith.constant 0 : i32
    %c0_i32_1 = arith.constant 0 : i32
    return %c0_i32, %c0_i32_0 : i32, i32
  }
  func.func @transform_5(%arg0: i32) -> (i32, i32) {
    %c0_i32 = arith.constant 0 : i32
    %c0_i32_0 = arith.constant 0 : i32
    %c0_i32_1 = arith.constant 0 : i32
    return %c0_i32, %c0_i32_0 : i32, i32
  }
  func.func @transform_6(%arg0: i32) -> (i32, i32) {
    %c0_i32 = arith.constant 0 : i32
    %c0_i32_0 = arith.constant 0 : i32
    %c0_i32_1 = arith.constant 0 : i32
    return %c0_i32, %c0_i32_0 : i32, i32
  }
  func.func @transform_7(%arg0: i32) -> (i32, i32) {
    %c0_i32 = arith.constant 0 : i32
    %c0_i32_0 = arith.constant 0 : i32
    return %arg0, %c0_i32 : i32, i32
  }
}

</mosaic_0001>

<bundles_post_ra>
// kernel: mlp_forward.1
= control target key start
LH: loop header
LB: loop body
LE: loop exit
PB: predicated region body
PF: predicated region fallthrough
CT: control target
= control target key end

     0   :  { %12 = vsyncpa [#allocation3], 0  ;;  %s903_s0 = inlined_call_operand.hbm [shape: f32[8,64], index: 0, kind: input, shape index: {}]   ;;  %s904_s1 = inlined_call_operand.hbm [shape: f32[64,128], index: 1, kind: input, shape index: {}]   ;;  %s905_s2 = inlined_call_operand.vmem [shape: f32[1,128], index: 2, kind: input, shape index: {}]   ;;  %s906_s3 = inlined_call_operand.hbm [shape: f32[128,128], index: 3, kind: input, shape index: {}]   ;;  %s907_s4 = inlined_call_operand.vmem [shape: f32[1,128], index: 4, kind: input, shape index: {}]   ;;  %s908_s5 = inlined_call_operand.hbm [shape: f32[128,128], index: 5, kind: input, shape index: {}]   ;;  %s909_s6 = inlined_call_operand.vmem [shape: f32[1,128], index: 6, kind: input, shape index: {}]   ;;  %s910_s7 = inlined_call_operand.hbm [shape: f32[8,128], index: 7, kind: output, shape index: {}]  }
   0x1   :  { %13 = vsyncpa [#allocation6], 0 }
   0x2   :  { %14 = vsyncpa [#allocation9], 0 }
   0x3   :  { %15 = vsyncpa [#allocation4], 0  ;;  %s752_s24 = smov [#allocation5]   ;;  %s634_s28 = scalar_lea.hbm %s904_s1, 1024 }
   0x4   :  { %s31_s25 = sshll.u32 %s752_s24, 4  ;;  %p635_p0 = scmp.ne.s32.totalorder %s904_s1, %s634_s28  ;;  %s32_s25 = int_to_ptr.vmem [resolvable:$true] %s31_s25 }
   0x5   :  { %p638_p1 = scmp.lt.u32.totalorder %s634_s28, %s904_s1 }
   0x7   :  { %p640_p2 = pnand %p638_p1, %p635_p0 }
   0x9   :  { %643 = shalt.err (!%p640_p2)
}
   0xa   :  { %s644_s10 = scalar_lea.vmem %s32_s25, 1024  ;;  %p649_p4 = scmp.lt.s32.totalorder %s32_s25, %s32_s25 }
   0xb   :  { %p645_p3 = scmp.ne.s32.totalorder %s32_s25, %s644_s10  ;;  %p650_p5 = scmp.lt.s32.totalorder %s644_s10, %s644_s10 }
   0xd   :  { %p651_p6 = por %p650_p5, %p649_p4 }
   0xf   :  { %p652_p7 = pnand %p651_p6, %p645_p3 }
  0x11   :  { %655 = shalt.err (!%p652_p7)
}
  0x12   :  { %s753_s11 = smov 128   ;;  %s754_s12 = smov 8  }
  0x13   :  { %37 = dma.hbm_to_vmem [thread:$0]  %s904_s1, 1024, %s32_s25, [#allocation6], %s753_s11, %s753_s11, %s754_s12  }
  0x14   :  { %s755_s15 = smov [#allocation2]   ;;  %s756_s17 = smov [#allocation7]  }
  0x15   :  { %s22_s16 = sshll.u32 %s755_s15, 4  ;;  %s45_s18 = sshll.u32 %s756_s17, 4  ;;  %s23_s16 = int_to_ptr.vmem [resolvable:$true] %s22_s16  ;;  %s46_s18 = int_to_ptr.vmem [resolvable:$true] %s45_s18 }
  0x16   :  { %s656_s21 = scalar_lea.hbm %s903_s0, 128 }
  0x17   :  { %p657_p8 = scmp.ne.s32.totalorder %s903_s0, %s656_s21  ;;  %p660_p9 = scmp.lt.u32.totalorder %s656_s21, %s903_s0 }
  0x19   :  { %p662_p10 = pnand %p660_p9, %p657_p8 }
  0x1b   :  { %665 = shalt.err (!%p662_p10)
}
  0x1c   :  { %s666_s1 = scalar_lea.vmem %s23_s16, 128  ;;  %p671_p12 = scmp.lt.s32.totalorder %s23_s16, %s23_s16 }
  0x1d   :  { %p667_p11 = scmp.ne.s32.totalorder %s23_s16, %s666_s1  ;;  %p672_p13 = scmp.lt.s32.totalorder %s666_s1, %s666_s1 }
  0x1f   :  { %p673_p0 = por %p672_p13, %p671_p12 }
  0x21   :  { %p674_p1 = pnand %p673_p0, %p667_p11 }
  0x23   :  { %677 = shalt.err (!%p674_p1)
}
  0x24   :  { %25 = dma.hbm_to_vmem [thread:$0]  %s903_s0, 128, %s23_s16, [#allocation3]  }
  0x25   :  { %s678_s30 = scalar_lea.hbm %s906_s3, 2048 }
  0x26   :  { %p679_p2 = scmp.ne.s32.totalorder %s906_s3, %s678_s30  ;;  %p682_p3 = scmp.lt.u32.totalorder %s678_s30, %s906_s3 }
  0x28   :  { %p684_p4 = pnand %p682_p3, %p679_p2 }
  0x2a   :  { %687 = shalt.err (!%p684_p4)
}
  0x2b   :  { %s688_s14 = scalar_lea.vmem %s46_s18, 2048  ;;  %p693_p6 = scmp.lt.s32.totalorder %s46_s18, %s46_s18 }
  0x2c   :  { %p689_p5 = scmp.ne.s32.totalorder %s46_s18, %s688_s14  ;;  %p694_p7 = scmp.lt.s32.totalorder %s688_s14, %s688_s14 }
  0x2e   :  { %p695_p8 = por %p694_p7, %p693_p6 }
  0x30   :  { %p696_p9 = pnand %p695_p8, %p689_p5 }
  0x32   :  { %699 = shalt.err (!%p696_p9)
}
  0x33   :  { %51 = dma.hbm_to_vmem [thread:$0]  %s906_s3, 2048, %s46_s18, [#allocation6], %s753_s11, %s753_s11, %s754_s12  }
  0x34   :  { %s757_s16 = smov [#allocation8]   ;;  %s700_s21 = scalar_lea.hbm %s908_s5, 2048 }
  0x35   :  { %s59_s17 = sshll.u32 %s757_s16, 4  ;;  %p701_p10 = scmp.ne.s32.totalorder %s908_s5, %s700_s21  ;;  %s60_s17 = int_to_ptr.vmem [resolvable:$true] %s59_s17 }
  0x36   :  { %p704_p11 = scmp.lt.u32.totalorder %s700_s21, %s908_s5 }
  0x38   :  { %p706_p12 = pnand %p704_p11, %p701_p10 }
  0x3a   :  { %709 = shalt.err (!%p706_p12)
}
  0x3b   :  { %s710_s1 = scalar_lea.vmem %s60_s17, 2048  ;;  %p715_p0 = scmp.lt.s32.totalorder %s60_s17, %s60_s17 }
  0x3c   :  { %p711_p13 = scmp.ne.s32.totalorder %s60_s17, %s710_s1  ;;  %p716_p1 = scmp.lt.s32.totalorder %s710_s1, %s710_s1 }
  0x3e   :  { %p717_p2 = por %p716_p1, %p715_p0 }
  0x40   :  { %p718_p3 = pnand %p717_p2, %p711_p13 }
  0x42   :  { %721 = shalt.err (!%p718_p3)
}
  0x43   :  { %65 = dma.hbm_to_vmem [thread:$0]  %s908_s5, 2048, %s60_s17, [#allocation9], %s753_s11, %s753_s11, %s754_s12  }
  0x44   :  { %744 = dma.done.wait [#allocation3], 128  }
  0x45   :  { %745 = vsyncadd [#allocation3], 4294967168 }
  0x46   :  { %746 = dma.done.wait [#allocation6], 3072  }
  0x47   :  { %747 = vsyncadd [#allocation6], 4294964224 }
  0x48   :  { %748 = dma.done.wait [#allocation9], 2048  }
  0x49   :  { %749 = vsyncadd [#allocation9], 4294965248  ;;  %v758_v0 = vmov 0.0|0.0   ;;  %vm759_vm0 = vmmov 0   ;;  %v760_v1 = vmov 0.0   ;;  %v80_v2 = vld [vmem:[#allocation5] sm:$0xff] }
  0x4a   :  { %556 = vmatprep.subr.bf16.mxu0 %v758_v0  ;;  %483 = vmatprep.mubr.msk.f32.mxu0 %vm759_vm0, %v760_v1  ;;  %v81_v3 = vld [vmem:[#allocation5 + $0x8] sm:$0xff]  ;;  %v82_v4 = vld [vmem:[#allocation5 + $0x10] sm:$0xff]  ;;  %v83_v6 = vld [vmem:[#allocation5 + $0x18] sm:$0xff]  ;;  %vm130_vm1 = vcmask 523264  }
  0x4b   :  { %568 = vmatprep.subr.bf16.mxu1 %v758_v0  ;;  %518 = vmatprep.mubr.msk.f32.mxu1 %vm759_vm0, %v760_v1  ;;  %v557_v5 = vpack.c.bf16 %v81_v3, %v80_v2  ;;  %v560_v7 = vpack.c.bf16 %v83_v6, %v82_v4  ;;  %v84_v8 = vld [vmem:[#allocation5 + $0x20] sm:$0xff]  ;;  %v85_v9 = vld [vmem:[#allocation5 + $0x28] sm:$0xff]  ;;  %v86_v11 = vld [vmem:[#allocation5 + $0x30] sm:$0xff] }
  0x4c   :  { %v563_v10 = vpack.c.bf16 %v85_v9, %v84_v8  ;;  %v87_v12 = vld [vmem:[#allocation5 + $0x38] sm:$0xff]  ;;  %v88_v19 = vld [vmem:[#allocation7] sm:$0xff]  ;;  %v89_v20 = vld [vmem:[#allocation7 + $0x8] sm:$0xff] }
  0x4d   :  { %558 = vmatpush3.bf16.msra.mxu0 %v557_v5  ;;  %v566_v13 = vpack.c.bf16 %v87_v12, %v86_v11  ;;  %v123_v14 = vld [vmem:[#allocation2] sm:$0xff]  ;;  %v90_v21 = vld [vmem:[#allocation7 + $0x10] sm:$0xff]  ;;  %v569_v22 = vpack.c.bf16 %v89_v20, %v88_v19  ;;  %v92_v25 = vld [vmem:[#allocation7 + $0x20] sm:$0xff] }
  0x4e   :  { %559 = vmatprep.subr.bf16.mxu0 %v758_v0  ;;  %v419_v15 = vld [vmem:[%s905_s2] ss:$0 sm:$0xff]  ;;  %v93_v26 = vld [vmem:[#allocation7 + $0x28] sm:$0xff]  ;;  %v94_v32 = vld [vmem:[#allocation7 + $0x30] sm:$0xff] }
  0x4f   :  { %v91_v23 = vld [vmem:[#allocation7 + $0x18] sm:$0xff]  ;;  %570 = vmatpush3.bf16.msra.mxu1 %v569_v22  ;;  %v575_v27 = vpack.c.bf16 %v93_v26, %v92_v25  ;;  %v96_v35 = vld [vmem:[#allocation7 + $0x40] sm:$0xff]  ;;  %v97_v36 = vld [vmem:[#allocation7 + $0x48] sm:$0xff] }
  0x50   :  { %v572_v24 = vpack.c.bf16 %v91_v23, %v90_v21  ;;  %571 = vmatprep.subr.bf16.mxu1 %v758_v0  ;;  %v95_v33 = vld [vmem:[#allocation7 + $0x38] sm:$0xff]  ;;  %v581_v37 = vpack.c.bf16 %v97_v36, %v96_v35  ;;  %v98_v38 = vld [vmem:[#allocation7 + $0x50] sm:$0xff]  ;;  %v100_v41 = vld [vmem:[#allocation7 + $0x60] sm:$0xff] }
  0x51   :  { %561 = vmatpush3.bf16.msra.mxu0 %v560_v7  ;;  %v578_v34 = vpack.c.bf16 %v95_v33, %v94_v32  ;;  %v99_v39 = vld [vmem:[#allocation7 + $0x58] sm:$0xff]  ;;  %v101_v42 = vld [vmem:[#allocation7 + $0x68] sm:$0xff]  ;;  %v102_v44 = vld [vmem:[#allocation7 + $0x70] sm:$0xff] }
  0x52   :  { %562 = vmatprep.subr.bf16.mxu0 %v758_v0  ;;  %v584_v40 = vpack.c.bf16 %v99_v39, %v98_v38  ;;  %v587_v43 = vpack.c.bf16 %v101_v42, %v100_v41  ;;  %v103_v45 = vld [vmem:[#allocation7 + $0x78] sm:$0xff]  ;;  %v104_v58 = vld [vmem:[#allocation8] sm:$0xff]  ;;  %v105_v59 = vld [vmem:[#allocation8 + $0x8] sm:$0xff] }
  0x53   :  { %573 = vmatpush3.bf16.msra.mxu1 %v572_v24  ;;  %v590_v46 = vpack.c.bf16 %v103_v45, %v102_v44  ;;  %v421_v54 = vld [vmem:[%s907_s4] ss:$0 sm:$0xff]  ;;  %v106_v60 = vld [vmem:[#allocation8 + $0x10] sm:$0xff]  ;;  %v593_v61 = vpack.c.bf16 %v105_v59, %v104_v58  ;;  %v109_v2 = vld [vmem:[#allocation8 + $0x28] sm:$0xff] }
  0x54   :  { %574 = vmatprep.subr.bf16.mxu1 %v758_v0  ;;  %v107_v62 = vld [vmem:[#allocation8 + $0x18] sm:$0xff]  ;;  %v110_v8 = vld [vmem:[#allocation8 + $0x30] sm:$0xff]  ;;  %v112_v11 = vld [vmem:[#allocation8 + $0x40] sm:$0xff] }
  0x55   :  { %564 = vmatpush3.bf16.msra.mxu0 %v563_v10  ;;  %v596_v63 = vpack.c.bf16 %v107_v62, %v106_v60  ;;  %v111_v9 = vld [vmem:[#allocation8 + $0x38] sm:$0xff]  ;;  %v113_v12 = vld [vmem:[#allocation8 + $0x48] sm:$0xff]  ;;  %v118_v20 = vld [vmem:[#allocation8 + $0x70] sm:$0xff] }
  0x56   :  { %565 = vmatprep.subr.bf16.mxu0 %v758_v0  ;;  %v602_v10 = vpack.c.bf16 %v111_v9, %v110_v8  ;;  %v119_v21 = vld [vmem:[#allocation8 + $0x78] sm:$0xff] }
  0x57   :  { %576 = vmatpush3.bf16.msra.mxu1 %v575_v27  ;;  %v614_v22 = vpack.c.bf16 %v119_v21, %v118_v20 }
  0x58   :  { %577 = vmatprep.subr.bf16.mxu1 %v758_v0 }
  0x59   :  { %567 = vmatpush3.bf16.msra.mxu0 %v566_v13  ;;  %v605_v13 = vpack.c.bf16 %v113_v12, %v112_v11 }
  0x5a   :  { %592 = vmatprep.subr.bf16.mxu0 %v758_v0 }
  0x5b   :  { %579 = vmatpush3.bf16.msra.mxu1 %v578_v34  ;;  %v386_v34 = vlaneseq }
  0x5c   :  { %484 = vmatmul.mubr.msk.f32.vlgmr.msra.gmra.mrb[0].mxu0 %vm130_vm1, %v123_v14  ;;  %580 = vmatprep.subr.bf16.mxu1 %v758_v0  ;;  %v114_v14 = vld [vmem:[#allocation8 + $0x50] sm:$0xff] }
  0x5d   :  { %553 = vmatprep.mubr.msk.f32.mxu0 %vm759_vm0, %v760_v1  ;;  %594 = vmatpush3.bf16.msra.mxu0 %v593_v61  ;;  %v108_v1 = vld [vmem:[#allocation8 + $0x20] sm:$0xff] }
  0x5e   :  { %595 = vmatprep.subr.bf16.mxu0 %v758_v0  ;;  %v599_v3 = vpack.c.bf16 %v109_v2, %v108_v1 }
  0x5f   :  { %582 = vmatpush3.bf16.msra.mxu1 %v581_v37 }
  0x60   :  { %583 = vmatprep.subr.bf16.mxu1 %v758_v0 }
  0x61   :  { %597 = vmatpush3.bf16.msra.mxu0 %v596_v63 }
  0x62   :  { %598 = vmatprep.subr.bf16.mxu0 %v758_v0 }
  0x63   :  { %585 = vmatpush3.bf16.msra.mxu1 %v584_v40 }
  0x64   :  { %586 = vmatprep.subr.bf16.mxu1 %v758_v0 }
  0x65   :  { %600 = vmatpush3.bf16.msra.mxu0 %v599_v3 }
  0x66   :  { %601 = vmatprep.subr.bf16.mxu0 %v758_v0 }
  0x67   :  { %588 = vmatpush3.bf16.msra.mxu1 %v587_v43 }
  0x68   :  { %589 = vmatprep.subr.bf16.mxu1 %v758_v0 }
  0x69   :  { %603 = vmatpush3.bf16.msra.mxu0 %v602_v10 }
  0x6a   :  { %604 = vmatprep.subr.bf16.mxu0 %v758_v0 }
  0x6b   :  { %591 = vmatpush3.bf16.msra.mxu1 %v590_v46 }
  0x6d   :  { %606 = vmatpush3.bf16.msra.mxu0 %v605_v13 }
  0x6e   :  { %607 = vmatprep.subr.bf16.mxu0 %v758_v0 }
 0x12f   :  { %v200_v16 = vpop.f32.mrb[0].mxu0 }
 0x130   :  { %v201_v17 = vadd.f32 %v419_v15, %v200_v16  ;;  %v485_v18 = vpop.f32.mrb[1].mxu0  ;;  %v115_v15 = vld [vmem:[#allocation8 + $0x58] sm:$0xff] }
 0x131   :  { %v608_v16 = vpack.c.bf16 %v115_v15, %v114_v14  ;;  %v117_v18 = vld [vmem:[#allocation8 + $0x68] sm:$0xff] }
 0x132   :  { %204 = vadd.xlane.f32.xlu0 %v201_v17 }
 0x133   :  { %609 = vmatpush3.bf16.msra.mxu0 %v608_v16 }
 0x134   :  { %610 = vmatprep.subr.bf16.mxu0 %v758_v0 }
 0x1bf   :  { %v205_v28 = vpop.xlane.xlu0 %204 }
 0x1c0   :  { %v206_v29 = vmul.f32 0.0078125, %v205_v28 }
 0x1c2   :  { %v207_v30 = vsub.f32 %v201_v17, %v206_v29  ;;  %v116_v17 = vld [vmem:[#allocation8 + $0x60] sm:$0xff] }
 0x1c3   :  { %v611_v19 = vpack.c.bf16 %v117_v18, %v116_v17 }
 0x1c4   :  { %v208_v31 = vmul.f32 %v207_v30, %v207_v30 }
 0x1c5   :  { %612 = vmatpush3.bf16.msra.mxu0 %v611_v19 }
 0x1c6   :  { %209 = vadd.xlane.f32.xlu0 %v208_v31  ;;  %613 = vmatprep.subr.bf16.mxu0 %v758_v0  ;;  %v387_v0 = vand.u32 127, %v386_v34 }
 0x1c8   :  { %vm388_vm2 = vcmp.lt.s32.totalorder %v387_v0, 32 }
 0x1c9   :  { %615 = vmatpush3.bf16.msra.mxu0 %v614_v22 }
 0x253   :  { %v210_v47 = vpop.xlane.xlu0 %209 }
 0x254   :  { %v211_v48 = vmul.f32 0.0078125, %v210_v47 }
 0x256   :  { %v212_v49 = vadd.f32 1e-05, %v211_v48 }
 0x258   :  { %626 = vrsqrt.f32 %v212_v49 }
 0x262   :  { %v627_v50 = vpop.eup %626 }
 0x263   :  { %v214_v51 = vmul.f32 %v627_v50, %v207_v30  ;;  %v422_v30 = vld [vmem:[%s909_s6] ss:$0 sm:$0xff]  ;;  %s761_s6 = smov [#allocation10]  }
 0x264   :  { %s408_s27 = sshll.u32 %s761_s6, 4  ;;  %s409_s27 = int_to_ptr.vmem [resolvable:$true] %s408_s27 }
 0x265   :  { %v215_v52 = vmul.f32 0.01, %v214_v51  ;;  %s722_s28 = scalar_lea.vmem %s409_s27, 128  ;;  %p727_p5 = scmp.lt.s32.totalorder %s409_s27, %s409_s27 }
 0x266   :  { %p723_p4 = scmp.ne.s32.totalorder %s409_s27, %s722_s28  ;;  %p728_p6 = scmp.lt.s32.totalorder %s722_s28, %s722_s28 }
 0x267   :  { %v216_v53 = vmax.f32 %v214_v51, %v215_v52 }
 0x268   :  { %p729_p7 = por %p728_p6, %p727_p5 }
 0x269   :  { %519 = vmatmul.mubr.f32.vlgmr.msra.gmra.mrb[0].mxu1 %v216_v53 }
 0x26a   :  { %p730_p8 = pnand %p729_p7, %p723_p4 }
 0x33c   :  { %v289_v55 = vpop.f32.mrb[0].mxu1 }
 0x33d   :  { %v290_v56 = vadd.f32 %v421_v54, %v289_v55  ;;  %v520_v57 = vpop.f32.mrb[1].mxu1 }
 0x33f   :  { %293 = vadd.xlane.f32.xlu1 %v290_v56 }
 0x3cc   :  { %v294_v4 = vpop.xlane.xlu1 %293 }
 0x3cd   :  { %v295_v5 = vmul.f32 0.0078125, %v294_v4 }
 0x3cf   :  { %v296_v6 = vsub.f32 %v290_v56, %v295_v5 }
 0x3d1   :  { %v297_v7 = vmul.f32 %v296_v6, %v296_v6 }
 0x3d3   :  { %298 = vadd.xlane.f32.xlu1 %v297_v7 }
 0x460   :  { %v299_v23 = vpop.xlane.xlu1 %298 }
 0x461   :  { %v300_v24 = vmul.f32 0.0078125, %v299_v23 }
 0x463   :  { %v301_v25 = vadd.f32 1e-05, %v300_v24 }
 0x465   :  { %628 = vrsqrt.f32 %v301_v25 }
 0x46f   :  { %v629_v26 = vpop.eup %628 }
 0x470   :  { %v303_v27 = vmul.f32 %v629_v26, %v296_v6 }
 0x472   :  { %v304_v28 = vmul.f32 0.01, %v303_v27 }
 0x474   :  { %v305_v29 = vmax.f32 %v303_v27, %v304_v28 }
 0x476   :  { %554 = vmatmul.mubr.f32.vlgmr.msra.gmra.mrb[2].mxu0 %v305_v29 }
 0x549   :  { %v378_v31 = vpop.f32.mrb[2].mxu0 }
 0x54a   :  { %v379_v32 = vadd.f32 %v422_v30, %v378_v31  ;;  %v555_v33 = vpop.f32.mrb[3].mxu0 }
 0x54c   :  { %382 = vadd.xlane.f32.xlu0 %v379_v32 }
 0x5d9   :  { %v383_v35 = vpop.xlane.xlu0 %382 }
 0x5da   :  { %v384_v36 = vmul.f32 0.03125, %v383_v35 }
 0x5dc   :  { %v385_v37 = vsub.f32 %v379_v32, %v384_v36 }
 0x5de   :  { %v391_v38 = vsel %vm388_vm2, %v385_v37, 0.0 }
 0x5df   :  { %v392_v39 = vmul.f32 %v391_v38, %v391_v38 }
 0x5e1   :  { %393 = vadd.xlane.f32.xlu1 %v392_v39 }
 0x66e   :  { %v394_v40 = vpop.xlane.xlu1 %393 }
 0x66f   :  { %v395_v41 = vmul.f32 0.03125, %v394_v40 }
 0x671   :  { %v396_v42 = vadd.f32 1e-05, %v395_v41 }
 0x673   :  { %630 = vrsqrt.f32 %v396_v42 }
 0x67d   :  { %v631_v43 = vpop.eup %630 }
 0x67e   :  { %v398_v44 = vmul.f32 %v631_v43, %v391_v38 }
 0x680   :  { %v423_v45 = vadd.f32 -2.0, %v398_v44 }
 0x682   :  { %632 = vtanh.f32 %v423_v45 }
 0x68c   :  { %v633_v46 = vpop.eup %632 }
 0x68d   :  { %401 = vst [vmem:[#allocation10] sm:$0xff] %v633_v46 }
 0x68e   :  { %733 = shalt.err (!%p730_p8)
}
 0x68f   :  { %s734_s8 = scalar_lea.hbm %s910_s7, 128 }
 0x690   :  { %p735_p9 = scmp.ne.s32.totalorder %s910_s7, %s734_s8  ;;  %p738_p10 = scmp.lt.u32.totalorder %s734_s8, %s910_s7 }
 0x692   :  { %p740_p11 = pnand %p738_p10, %p735_p9 }
 0x694   :  { %743 = shalt.err (!%p740_p11)
}
 0x695   :  { %411 = dma.vmem_to_hbm [thread:$0]  %s409_s27, 128, %s910_s7, [#allocation4]  }
 0x696   :  { %750 = dma.done.wait [#allocation4], 128  }
 0x697   :  { %751 = vsyncadd [#allocation4], 4294967168 }
 0x698   :  { %415 = vsyncpa [#allocation3], 1 }
 0x699   :  { %416 = vsyncpa [#allocation6], 1 }
 0x69a   :  { %417 = vsyncpa [#allocation9], 1 }
 0x69b   :  { %418 = vsyncpa [#allocation4], 1 }

</bundles_post_ra>
